<compile_context>
chip_gen: v5e
topology: v5e:2x2
jax: 0.10.0
libtpu: 0.0.40
codegen_flags: <defaults>
</compile_context>

<pallas_src>
import numpy as np
import jax
import jax.numpy as jnp
from jax.experimental import pallas as pl
from jax.experimental.pallas import tpu as pltpu

OUT_H = 7
OUT_W = 7
M_ROWS = OUT_H * OUT_W          # 49
M_ROWS_PAD = 56                 # 49 padded up to a sublane multiple (8)


# ----------------------------------------------------------------------------
# Glue (plain JAX): exact torchvision roi_align (aligned=False, sampling_ratio=-1)
# sampling weights, separable along y and x.
# ----------------------------------------------------------------------------
def _axis_weights(start, bin_size, grid_n, size, out_n, max_g):
    """1-D bilinear sampling weights, summed over sample points of each output bin.

    start, bin_size: (R,) f32, grid_n: (R,) i32.  Returns (R, out_n, size) f32.
    Follows torchvision's bilinear_interpolate boundary handling exactly.
    """
    ph = jnp.arange(out_n, dtype=jnp.float32)[None, :, None]       # (1, out_n, 1)
    i = jnp.arange(max_g, dtype=jnp.float32)[None, None, :]        # (1, 1, max_g)
    g = grid_n.astype(jnp.float32)[:, None, None]
    b = bin_size[:, None, None]
    s = start[:, None, None]

    y = s + ph * b + (i + 0.5) * b / g                             # (R, out_n, max_g)
    valid = (jnp.arange(max_g)[None, None, :] < grid_n[:, None, None])
    valid = valid & (y >= -1.0) & (y <= float(size))
    y = jnp.maximum(y, 0.0)
    y_low = jnp.floor(y).astype(jnp.int32)
    at_edge = y_low >= size - 1
    y_low = jnp.where(at_edge, size - 1, y_low)
    y_high = jnp.where(at_edge, size - 1, y_low + 1)
    yv = jnp.where(at_edge, y_low.astype(jnp.float32), y)
    ly = yv - y_low.astype(jnp.float32)
    hy = 1.0 - ly
    vf = valid.astype(jnp.float32)

    pos = jnp.arange(size)
    w_low = (hy * vf)[..., None] * (y_low[..., None] == pos)       # (R, out_n, max_g, size)
    w_high = (ly * vf)[..., None] * (y_high[..., None] == pos)
    return (w_low + w_high).sum(axis=2)                            # (R, out_n, size)


def _roi_weight_matrix(rois_scaled, H, W, max_coord_h, max_coord_w):
    """Per-RoI interpolation matrix M: out[r, p] = M[r, p, :] @ feat_flat.  (R, 49, H*W)."""
    x1, y1 = rois_scaled[:, 1], rois_scaled[:, 2]
    x2, y2 = rois_scaled[:, 3], rois_scaled[:, 4]
    roi_w = jnp.maximum(x2 - x1, 1.0)          # aligned=False legacy behaviour
    roi_h = jnp.maximum(y2 - y1, 1.0)
    bin_w = roi_w / OUT_W
    bin_h = roi_h / OUT_H
    grid_h = jnp.ceil(roi_h / OUT_H).astype(jnp.int32)   # sampling_ratio=-1 (adaptive)
    grid_w = jnp.ceil(roi_w / OUT_W).astype(jnp.int32)
    # Static cap on adaptive sample points per axis.  max_coord_* tracks the cumulative
    # per-level scaling applied so far, so multi-level (cumulative) scaling is covered.
    # TODO(synk): assumes input rois are normalized to [0,1]; un-normalized rois could
    # exceed this cap and drop extra sample points.
    max_gh = int(np.ceil(max_coord_h / OUT_H)) + 1
    max_gw = int(np.ceil(max_coord_w / OUT_W)) + 1

    wy = _axis_weights(y1, bin_h, grid_h, H, OUT_H, max_gh)        # (R, 7, H)
    wx = _axis_weights(x1, bin_w, grid_w, W, OUT_W, max_gw)        # (R, 7, W)
    count = jnp.maximum(grid_h * grid_w, 1).astype(jnp.float32)

    m = jnp.einsum('rph,rqw->rpqhw', wy, wx) / count[:, None, None, None, None]
    return m.reshape(rois_scaled.shape[0], M_ROWS, H * W)


# ----------------------------------------------------------------------------
# Pallas kernel: one (channel-tile, RoI) grid step = one bf16 MXU matmul.
# ----------------------------------------------------------------------------
def _roi_align_matmul_kernel(bidx_ref, feat_ref, m_ref, out_ref):
    # feat_ref: (1, HW, TC)  bf16 -- temporally pooled features of this RoI's clip,
    #                                channel tile picked by the grid; the block is
    #                                reused (no DMA) across consecutive RoIs of the
    #                                same clip because RoIs are sorted by batch idx.
    # m_ref:    (1, 56, HW)  bf16 -- per-RoI bilinear interpolation weights (rows 49..55 zero).
    # out_ref:  (1, 56, TC)  f32  -- RoIAlign output rows.
    del bidx_ref  # consumed only by the index_maps
    out_ref[0] = jnp.dot(m_ref[0], feat_ref[0],
                         preferred_element_type=jnp.float32)


def _pick_channel_tile(HW, C):
    """Largest channel tile (multiple of 128, <=512, or full C) whose bf16 feature
    block stays under ~2 MiB of VMEM (double-buffered by the pipeline)."""
    budget = 2 << 20
    max_tc = min(512, max(128, ((budget // (HW * 2)) // 128) * 128))
    if C <= max_tc:
        return C, C                       # single full-channel tile (no padding)
    tc = max_tc
    return tc, ((C + tc - 1) // tc) * tc  # tile, padded channel count


def _roi_extract(feat_nhwc, m_pad, batch_idx, tc):
    """feat_nhwc: (N, HW, Cp) bf16 (temporally pooled), m_pad: (R, 56, HW) bf16 sorted
    by batch, batch_idx: (R,) i32 sorted.  Returns (R, 56, Cp) f32 in sorted order."""
    N, HW, Cp = feat_nhwc.shape
    R = m_pad.shape[0]
    ncb = Cp // tc

    cost = pl.CostEstimate(
        flops=2 * R * M_ROWS_PAD * HW * Cp,
        transcendentals=0,
        bytes_accessed=(N * HW * Cp * 2            # features (best-case reuse)
                        + ncb * R * M_ROWS_PAD * HW * 2   # interp matrices
                        + R * M_ROWS_PAD * Cp * 4))        # output

    grid_spec = pltpu.PrefetchScalarGridSpec(
        num_scalar_prefetch=1,
        # channel tile outer, RoI inner: the sorted batch index makes the feature
        # block index constant across consecutive inner steps -> Pallas skips the DMA.
        grid=(ncb, R),
        in_specs=[
            pl.BlockSpec((1, HW, tc), lambda c, r, b: (b[r], 0, c)),
            pl.BlockSpec((1, M_ROWS_PAD, HW), lambda c, r, b: (r, 0, 0)),
        ],
        out_specs=pl.BlockSpec((1, M_ROWS_PAD, tc), lambda c, r, b: (r, 0, c)),
    )
    return pl.pallas_call(
        _roi_align_matmul_kernel,
        out_shape=jax.ShapeDtypeStruct((R, M_ROWS_PAD, Cp), jnp.float32),
        grid_spec=grid_spec,
        cost_estimate=cost,
        compiler_params=pltpu.CompilerParams(
            dimension_semantics=("parallel", "parallel")),
    )(batch_idx, feat_nhwc, m_pad)


# ----------------------------------------------------------------------------
# Module-equivalent forward
# ----------------------------------------------------------------------------
def single_roi_extractor3d_acar_forward(feat, rois):
    """feat: array or tuple of (N, C, T, H, W) arrays; rois: (R, 5) [b, x1, y1, x2, y2]."""
    if not isinstance(feat, (tuple, list)):
        feat = (feat,)
    feat = tuple(feat)
    roi_features = []
    rois = rois.astype(jnp.float32)
    cum_h, cum_w = 1.0, 1.0
    for f in feat:
        N, C, T, H, W = f.shape

        # AdaptiveAvgPool3d((1,H,W)): temporal mean hoisted out of the per-RoI kernel.
        pooled = jnp.mean(f.astype(jnp.float32), axis=2)                 # (N, C, H, W)
        feat_nhwc = jnp.transpose(pooled, (0, 2, 3, 1)).reshape(N, H * W, C)

        # mirrors the in-loop `rois = rois.clone(); rois[:, i] *= ...` rebinding of the
        # PyTorch module (cumulative scaling across pyramid levels).
        scale = jnp.array([1.0, W, H, W, H], dtype=jnp.float32)
        rois = rois * scale[None, :]
        cum_h *= H
        cum_w *= W
        batch_idx = rois[:, 0].astype(jnp.int32)

        m = _roi_weight_matrix(rois, H, W, cum_h, cum_w)                 # (R, 49, HW) f32
        R = m.shape[0]
        # pad interpolation rows 49 -> 56 (sublane aligned, unmasked MXU loads/stores)
        m = jnp.pad(m, ((0, 0), (0, M_ROWS_PAD - M_ROWS), (0, 0)))

        # sort RoIs by batch index so consecutive grid steps reuse the feature block.
        order = jnp.argsort(batch_idx)
        inv_order = jnp.argsort(order)
        batch_sorted = batch_idx[order]
        m_sorted = m[order].astype(jnp.bfloat16)

        # adaptive channel tiling (full C when small, else padded to a tile multiple).
        tc, c_pad = _pick_channel_tile(H * W, C)
        feat_bf16 = feat_nhwc.astype(jnp.bfloat16)
        if c_pad != C:
            feat_bf16 = jnp.pad(feat_bf16, ((0, 0), (0, 0), (0, c_pad - C)))

        out = _roi_extract(feat_bf16, m_sorted, batch_sorted, tc)        # (R, 56, c_pad)
        out = out[inv_order, :M_ROWS, :C]                                # unsort + unpad
        out = jnp.transpose(out.reshape(R, OUT_H, OUT_W, C), (0, 3, 1, 2))  # (R, C, 7, 7)
        roi_features.append(out)
    roi_features = jnp.concatenate(roi_features, axis=1)
    return roi_features, feat


# ----------------------------------------------------------------------------
if __name__ == "__main__":
    key = jax.random.PRNGKey(0)
    N, C, T, H, W = 2, 8, 4, 16, 16
    R = 6
    k1, k2, k3 = jax.random.split(key, 3)

    feat = jax.random.normal(k1, (N, C, T, H, W), dtype=jnp.float32)
    xy = jax.random.uniform(k2, (R, 4), dtype=jnp.float32)
    x1 = jnp.minimum(xy[:, 0], xy[:, 2]); x2 = jnp.maximum(xy[:, 0], xy[:, 2])
    y1 = jnp.minimum(xy[:, 1], xy[:, 3]); y2 = jnp.maximum(xy[:, 1], xy[:, 3])
    bidx = jax.random.randint(k3, (R,), 0, N).astype(jnp.float32)
    rois = jnp.stack([bidx, x1, y1, x2, y2], axis=1)            # normalized rois

    roi_feats, feat_out = single_roi_extractor3d_acar_forward(feat, rois)
    roi_feats = jax.block_until_ready(roi_feats)
    assert roi_feats.shape == (R, C, OUT_H, OUT_W)
    assert len(feat_out) == 1 and feat_out[0].shape == (N, C, T, H, W)

    # Pure-JAX f32 reference for the hot path: temporal mean + RoIAlign interp matmul.
    scale = jnp.array([1.0, W, H, W, H], dtype=jnp.float32)
    rs = rois * scale[None, :]
    m_ref = _roi_weight_matrix(rs, H, W, float(H), float(W))
    fm = jnp.mean(feat, axis=2)                                  # (N, C, H, W)
    fm_flat = jnp.transpose(fm, (0, 2, 3, 1)).reshape(N, H * W, C)
    ref = jnp.einsum('rph,rhc->rpc', m_ref, fm_flat[rois[:, 0].astype(jnp.int32)],
                     precision=jax.lax.Precision.HIGHEST)
    ref = jnp.transpose(ref.reshape(R, OUT_H, OUT_W, C), (0, 3, 1, 2))
    # kernel uses bf16 operands with f32 accumulation -> compare at bf16-level tolerance
    if not jnp.allclose(ref, roi_feats, atol=2e-2, rtol=2e-2):
        raise AssertionError("Pallas RoIAlign output mismatch vs JAX reference")

    print("KERNEL_OK")
</pallas_src>

<mosaic_0001>
module attributes {stable_mosaic.version = 11 : i64} {
  func.func @_roi_align_matmul_kernel(%arg0: i32, %arg1: i32, %arg2: memref<6xi32, #tpu.memory_space<smem>>, %arg3: memref<1x256x8xbf16, #tpu.memory_space<vmem>>, %arg4: memref<1x56x256xbf16, #tpu.memory_space<vmem>>, %arg5: memref<1x56x8xf32, #tpu.memory_space<vmem>>) attributes {dimension_semantics = [#tpu.dimension_semantics<parallel>, #tpu.dimension_semantics<parallel>], iteration_bounds = array<i64: 1, 6>, scalar_prefetch = 1 : i64, scratch_operands = 0 : i64, tpu.core_type = #tpu.core_type<tc>, window_params = [{transform_indices = @transform_0, window_bounds = array<i64: 1, 256, 8>}, {transform_indices = @transform_1, window_bounds = array<i64: 1, 56, 256>}, {transform_indices = @transform_2, window_bounds = array<i64: 1, 56, 8>}]} {
    %c0 = arith.constant 0 : index
    %c0_0 = arith.constant 0 : index
    %c0_1 = arith.constant 0 : index
    %0 = vector.load %arg4[%c0, %c0_0, %c0_1] : memref<1x56x256xbf16, #tpu.memory_space<vmem>>, vector<1x56x256xbf16>
    %1 = vector.shape_cast %0 : vector<1x56x256xbf16> to vector<56x256xbf16>
    %c0_2 = arith.constant 0 : index
    %c0_3 = arith.constant 0 : index
    %c0_4 = arith.constant 0 : index
    %2 = vector.load %arg3[%c0_2, %c0_3, %c0_4] : memref<1x256x8xbf16, #tpu.memory_space<vmem>>, vector<1x256x8xbf16>
    %3 = vector.shape_cast %2 : vector<1x256x8xbf16> to vector<256x8xbf16>
    %cst = arith.constant dense<0.000000e+00> : vector<56x8xf32>
    %4 = tpu.matmul %1, %3, %cst {dimension_numbers = #tpu.dot_dimension_numbers<[1], [0], [0], [1], [0, 0, 1, 1], [], []>} : vector<56x256xbf16>, vector<256x8xbf16>, vector<56x8xf32> -> vector<56x8xf32>
    %c0_5 = arith.constant 0 : index
    %c0_6 = arith.constant 0 : index
    %c0_7 = arith.constant 0 : index
    %5 = vector.load %arg5[%c0_5, %c0_6, %c0_7] : memref<1x56x8xf32, #tpu.memory_space<vmem>>, vector<1x56x8xf32>
    %6 = vector.shape_cast %5 : vector<1x56x8xf32> to vector<56x8xf32>
    %7 = vector.shape_cast %4 : vector<56x8xf32> to vector<1x56x8xf32>
    tpu.vector_store %arg5[%c0_5, %c0_6, %c0_7], %7 {strides = array<i32>} : memref<1x56x8xf32, #tpu.memory_space<vmem>>, vector<1x56x8xf32>,
    return
  }
  func.func @transform_0(%arg0: i32, %arg1: i32, %arg2: memref<6xi32, #tpu.memory_space<smem>>) -> (i32, i32, i32) {
    %0 = arith.index_cast %arg1 : i32 to index
    %1 = memref.load %arg2[%0] : memref<6xi32, #tpu.memory_space<smem>>
    %c0_i32 = arith.constant 0 : i32
    %c0_i32_0 = arith.constant 0 : i32
    return %1, %c0_i32, %arg0 : i32, i32, i32
  }
  func.func @transform_1(%arg0: i32, %arg1: i32, %arg2: memref<6xi32, #tpu.memory_space<smem>>) -> (i32, i32, i32) {
    %c0_i32 = arith.constant 0 : i32
    %c0_i32_0 = arith.constant 0 : i32
    %c0_i32_1 = arith.constant 0 : i32
    return %arg1, %c0_i32, %c0_i32_0 : i32, i32, i32
  }
  func.func @transform_2(%arg0: i32, %arg1: i32, %arg2: memref<6xi32, #tpu.memory_space<smem>>) -> (i32, i32, i32) {
    %c0_i32 = arith.constant 0 : i32
    %c0_i32_0 = arith.constant 0 : i32
    return %arg1, %c0_i32, %arg0 : i32, i32, i32
  }
}

</mosaic_0001>

<bundles_post_ra>
// kernel: tpu_custom_call.1
= control target key start
LH: loop header
LB: loop body
LE: loop exit
PB: predicated region body
PF: predicated region fallthrough
CT: control target
= control target key end

     0   :  { %s872_s15 = smov [#allocation3]   ;;  %s1024_s0 = inlined_call_operand.vmem [shape: s32[6], index: 0, kind: input, shape index: {}]   ;;  %s1025_s1 = inlined_call_operand.vmem [shape: bf16[2,256,8], index: 1, kind: input, shape index: {}]   ;;  %s1026_s2 = inlined_call_operand.hbm [shape: bf16[6,56,256], index: 2, kind: input, shape index: {}]   ;;  %s1027_s3 = inlined_call_operand.vmem [shape: f32[6,56,8], index: 3, kind: output, shape index: {}]  }
   0x1   :  { %s9_s14 = sshll.u32 %s1024_s0, 4  ;;  %s10_s14 = int_to_ptr.vmem [resolvable:$true] %s9_s14 }
   0x2   :  { %12 = dma.vmem_to_smem %s10_s14, 16, %s872_s15, [#allocation2] }
   0x3   :  { %842 = dma.done.wait [#allocation2], 16 }
   0x4   :  { %843 = vsyncadd [#allocation2], 4294967280 }
   0x5   :  { %15 = sfence }
   0x6   :  { %16 = vsyncpa [#allocation5], 0 }
   0x7   :  { %18 = vsyncpa [#allocation5 + $0x1], 0  ;;  %s898_s16 = smov 0   ;;  %s900_s17 = smov 0  }
   0x8   :  { %s902_s18 = smov 0   ;;  %s904_s19 = smov 0  }
   0x9   :  { %s906_s20 = smov 0   ;;  %s908_s21 = smov 0  }
   0xa LB: > { %s576_s0 = sadd.s32 4294967295, %s870_s21   ;;  %s33_s22 = sadd.s32 1, %s866_s20  ;;  %s870_s21 = sphi %s908_s21, %s24_s21   ;;  %s866_s20 = sphi %s906_s20, %s1033_s20   ;;  %s862_s19 = sphi %s904_s19, %s1032_s19   ;;  %s858_s18 = sphi %s902_s18, %s1031_s18   ;;  %s854_s17 = sphi %s900_s17, %s1030_s17   ;;  %s850_s16 = sphi %s898_s16, %s1029_s16  }
   0xb   : > { %p34_p0 = scmp.ge.s32.totalorder %s33_s22, 6  ;;  %s73_s23 = sadd.s32 1, %s858_s18 }
   0xc   : > { %p80_p1 = scmp.ne.s32.totalorder %s858_s18, %s854_s17  ;;  %p81_p2 = scmp.eq.s32.totalorder %s870_s21, 0 }
   0xd   : > { %s1035_s22 = smov (%p34_p0, %s33_s22), 0  ;;  %p86_p4 = scmp.ne.s32.totalorder %s854_s17, %s850_s16 }
   0xe   : > { %p82_p3 = por %p81_p2, %p80_p1  ;;  %s70_s24 = ssub.s32 %s866_s20, %s1035_s22 }
   0xf   : > { %p87_p5 = scmp.eq.s32.totalorder %s576_s0, 0  ;;  %p71_p6 = scmp.eq.s32.totalorder %s70_s24, 0 }
  0x10   : > { %p724_p8 = scmp.lt.s32.totalorder %s870_s21, 6  ;;  %s151_s27 = sand.u32 1, %s858_s18  }
  0x11   : > { %p937_p7 = por %p87_p5, %p86_p4  ;;  %s715_s28 = smul.u32 56, %s866_s20 }
  0x12   : > { %s943_s26 = scalar_select %p71_p6, %s858_s18, %s73_s23  }
  0x13   : > { %s714_s29 = smul.u32 56, %s151_s27  ;;  %s160_s5 = scalar_lea.hbm %s1026_s2, %s715_s28 }
  0x14   : > { %p721_p9 = pnand %p724_p8, %p82_p3  ;;  %s161_s6 = sshll.u32 %s160_s5, 4  ;;  %s162_s6 = int_to_ptr.hbm [resolvable:$true] %s161_s6 }
  0x15   : > { %s155_s7 = scalar_lea.vmem [#allocation4], %s714_s29  ;;  %s152_s9 = scalar_lea.sflag [#allocation5], %s151_s27 }
  0x16   : > { %s163_s8 = sshll.u32 %s155_s7, 4  ;;  %s873_s10 = smov 128   ;;  %s164_s8 = int_to_ptr.vmem [resolvable:$true] %s163_s8 }
  0x17   : > { %s874_s11 = smov 8   ;;  %p581_p10 = scmp.ge.s32.totalorder %s870_s21, 1 }
  0x18   : > { %723 = dma.hbm_to_vmem [thread:$0]  (!%p721_p9), %s162_s6, 896, %s164_s8, %s152_s9, %s873_s10, %s873_s10, %s874_s11  }
  0x19   : > { %p171_p11 = scmp.lt.s32.totalorder %s870_s21, 7 }
  0x1b   : > { %p172_p12 = pnand %p581_p10, %p171_p11 }
  0x1c   : > { %s177_s12 = sand.u32 (!%p172_p12), 1, %s854_s17  }
  0x1d   : > { %175 = sbr.rel (%p172_p12) target bundleno = 235 (0xeb), region = 28  ;;  %s178_s14 = scalar_lea.sflag (!%p172_p12), [#allocation5], %s177_s12 }
  0x1e   : > { %s716_s13 = smul.u32 (!%p172_p12), 56, %s177_s12 }
  0x20   : > { %s953_s15 = scalar_lea.vmem (!%p172_p12), [#allocation4], %s716_s13 }
  0x22   : > { %845 = dma.done.wait (%p937_p7), %s178_s14, 896  }
  0x23   : > { %847 = vsyncadd (%p937_p7), %s178_s14, 4294966400  ;;  %s215_s16 = sld [smem:[#allocation3 + %s862_s19]]  ;;  %v587_v14 = vld [vmem:[%s953_s15] sm:$0xf]  ;;  %v677_v16 = vld [vmem:[%s953_s15 + $0x4] sm:$0xf0] }
  0x24   : > { %v603_v17 = vld [vmem:[%s953_s15 + $0x20] sm:$0xf]  ;;  %v681_v19 = vld [vmem:[%s953_s15 + $0x24] sm:$0xf0]  ;;  %v676_v20 = vld [vmem:[%s953_s15 + $0x4] sm:$0xf]  ;;  %v588_v24 = vor.u32 %v677_v16, %v587_v14 }
  0x25   : > { %v589_v21 = vld [vmem:[%s953_s15 + $0x8] sm:$0xf0]  ;;  %v680_v22 = vld [vmem:[%s953_s15 + $0x24] sm:$0xf]  ;;  %v604_v25 = vor.u32 %v681_v19, %v603_v17  ;;  %v239_v28 = vld [vmem:[%s953_s15 + $0x30] sm:$0xff]  ;;  %p225_p0 = scmp.lt.s32.totalorder %s862_s19, 5 }
  0x26   : > { %v605_v23 = vld [vmem:[%s953_s15 + $0x28] sm:$0xf0]  ;;  %v592_v26 = vor.u32 %v676_v20, %v589_v21  ;;  %v291_v29 = vunpack.c.l.b16 %v239_v28  ;;  %v595_v30 = vld [vmem:[%s953_s15 + $0x10] sm:$0xf]  ;;  %v679_v31 = vld [vmem:[%s953_s15 + $0x14] sm:$0xf0]  ;;  %v292_v32 = vunpack.c.h.b16 %v239_v28 }
  0x27   : > { %v608_v27 = vor.u32 %v680_v22, %v605_v23  ;;  %v678_v33 = vld [vmem:[%s953_s15 + $0x14] sm:$0xf]  ;;  %v597_v34 = vld [vmem:[%s953_s15 + $0x18] sm:$0xf0]  ;;  %v596_v35 = vor.u32 %v679_v31, %v595_v30  ;;  %s1039_s19 = smov (!%p225_p0, %s862_s19), 5  ;;  %vm461_vm0 = vcmask 64512  }
  0x28   : > { %v299_v36 = vpack.c.b16 %v291_v29, %v291_v29  ;;  %v600_v37 = vor.u32 %v678_v33, %v597_v34  ;;  %v300_v38 = vpack.c.b16 %v292_v32, %v292_v32  ;;  %s717_s25 = smul.u32 56, %s1039_s19 }
  0x29   : > { %p216_p13 = scmp.lt.s32.totalorder %s215_s16, 1 }
  0x2a   : > { %s232_s30 = scalar_lea.vmem %s1027_s3, %s717_s25 }
  0x2b   : > { %s1037_s16 = smov (!%p216_p13, %s215_s16), 1 }
  0x2c   : > { %s675_s0 = sshll.u32 %s1037_s16, 7 }
  0x2d   : > { %s963_s27 = scalar_lea.vmem %s1025_s1, %s675_s0 }
  0x2e   : > { %v689_v0 = vld [vmem:[%s963_s27 + $0x38] sm:$0xff]  ;;  %v688_v2 = vld [vmem:[%s963_s27 + $0x30] sm:$0xff]  ;;  %v687_v4 = vld [vmem:[%s963_s27 + $0x28] sm:$0xff] }
  0x2f   : > { %v697_v1 = vld [vmem:[%s963_s27 + $0x78] sm:$0xff]  ;;  %405 = vmatpush.bf16.msra.mxu0 %v689_v0  ;;  %698 = vmatpush.bf16.msra.mxu2 %v689_v0  ;;  %v696_v3 = vld [vmem:[%s963_s27 + $0x70] sm:$0xff]  ;;  %v695_v5 = vld [vmem:[%s963_s27 + $0x68] sm:$0xff] }
  0x30   : > { %433 = vmatpush.bf16.msra.mxu1 %v697_v1  ;;  %706 = vmatpush.bf16.msra.mxu3 %v697_v1  ;;  %v686_v6 = vld [vmem:[%s963_s27 + $0x20] sm:$0xff]  ;;  %v685_v8 = vld [vmem:[%s963_s27 + $0x18] sm:$0xff]  ;;  %v684_v10 = vld [vmem:[%s963_s27 + $0x10] sm:$0xff] }
  0x31   : > { %v694_v7 = vld [vmem:[%s963_s27 + $0x60] sm:$0xff]  ;;  %v693_v9 = vld [vmem:[%s963_s27 + $0x58] sm:$0xff]  ;;  %v692_v11 = vld [vmem:[%s963_s27 + $0x50] sm:$0xff] }
  0x32   : > { %v683_v12 = vld [vmem:[%s963_s27 + $0x8] sm:$0xff]  ;;  %v682_v15 = vld [vmem:[%s963_s27] sm:$0xff] }
  0x33   : > { %406 = vmatpush.bf16.msra.mxu0 %v688_v2  ;;  %699 = vmatpush.bf16.msra.mxu2 %v688_v2  ;;  %v691_v13 = vld [vmem:[%s963_s27 + $0x48] sm:$0xff]  ;;  %v690_v18 = vld [vmem:[%s963_s27 + $0x40] sm:$0xff] }
  0x34   : > { %434 = vmatpush.bf16.msra.mxu1 %v696_v3  ;;  %707 = vmatpush.bf16.msra.mxu3 %v696_v3 }
  0x37   : > { %407 = vmatpush.bf16.msra.mxu0 %v687_v4  ;;  %700 = vmatpush.bf16.msra.mxu2 %v687_v4 }
  0x38   : > { %435 = vmatpush.bf16.msra.mxu1 %v695_v5  ;;  %708 = vmatpush.bf16.msra.mxu3 %v695_v5 }
  0x3b   : > { %408 = vmatpush.bf16.msra.mxu0 %v686_v6  ;;  %701 = vmatpush.bf16.msra.mxu2 %v686_v6 }
  0x3c   : > { %436 = vmatpush.bf16.msra.mxu1 %v694_v7  ;;  %709 = vmatpush.bf16.msra.mxu3 %v694_v7 }
  0x3f   : > { %409 = vmatpush.bf16.msra.mxu0 %v685_v8  ;;  %702 = vmatpush.bf16.msra.mxu2 %v685_v8 }
  0x40   : > { %437 = vmatpush.bf16.msra.mxu1 %v693_v9  ;;  %710 = vmatpush.bf16.msra.mxu3 %v693_v9 }
  0x43   : > { %410 = vmatpush.bf16.msra.mxu0 %v684_v10  ;;  %703 = vmatpush.bf16.msra.mxu2 %v684_v10 }
  0x44   : > { %438 = vmatpush.bf16.msra.mxu1 %v692_v11  ;;  %711 = vmatpush.bf16.msra.mxu3 %v692_v11 }
  0x47   : > { %411 = vmatpush.bf16.msra.mxu0 %v683_v12  ;;  %704 = vmatpush.bf16.msra.mxu2 %v683_v12 }
  0x48   : > { %439 = vmatpush.bf16.msra.mxu1 %v691_v13  ;;  %712 = vmatpush.bf16.msra.mxu3 %v691_v13 }
  0x4b   : > { %412 = vmatpush.bf16.msra.mxu0 %v682_v15  ;;  %705 = vmatpush.bf16.msra.mxu2 %v682_v15 }
  0x4c   : > { %440 = vmatpush.bf16.msra.mxu1 %v690_v18  ;;  %713 = vmatpush.bf16.msra.mxu3 %v690_v18 }
  0x4e   : > { %413 = vmatmul.bf16.vlgmr.msra.gmra.mxu0 %v588_v24  ;;  %423 = vmatmul.bf16.vlgmr.msra.gmra.mxu2 %v604_v25 }
  0x4f   : > { %441 = vmatmul.bf16.vlgmr.msra.gmra.mxu1 %v592_v26  ;;  %451 = vmatmul.bf16.vlgmr.msra.gmra.mxu3 %v608_v27 }
  0x5e   : > { %418 = vmatmul.bf16.gmra.mxu0 %v596_v35  ;;  %428 = vmatmul.bf16.gmra.mxu2 %v299_v36 }
  0x5f   : > { %446 = vmatmul.bf16.gmra.mxu1 %v600_v37  ;;  %456 = vmatmul.bf16.gmra.mxu3 %v300_v38 }
  0xcb   : > { %v414_v39 = vpop.f32.mrf.mxu0 }
  0xcc   : > { %v442_v40 = vpop.f32.mrf.mxu1 }
  0xcd   : > { %v443_v41 = vadd.f32 %v442_v40, %v414_v39 }
  0xcf   : > { %462 = vst.msk [vmem:[%s232_s30] sm:$0xff] %vm461_vm0, %v443_v41 }
  0xd1   : > { %v424_v42 = vpop.f32.mrf.mxu2 }
  0xd2   : > { %v452_v43 = vpop.f32.mrf.mxu3 }
  0xd3   : > { %v453_v44 = vadd.f32 %v452_v43, %v424_v42  ;;  %v416_v45 = vpop.f32.mrf.mxu0 }
  0xd4   : > { %v444_v46 = vpop.f32.mrf.mxu1 }
  0xd5   : > { %466 = vst.msk [vmem:[%s232_s30 + $0x20] sm:$0xff] %vm461_vm0, %v453_v44  ;;  %v445_v47 = vadd.f32 %v444_v46, %v416_v45 }
  0xd7   : > { %463 = vst.msk [vmem:[%s232_s30 + $0x8] sm:$0xff] %vm461_vm0, %v445_v47 }
  0xd9   : > { %v426_v48 = vpop.f32.mrf.mxu2 }
  0xda   : > { %v454_v49 = vpop.f32.mrf.mxu3 }
  0xdb   : > { %v455_v50 = vadd.f32 %v454_v49, %v426_v48  ;;  %v419_v51 = vpop.f32.mrf.mxu0 }
  0xdc   : > { %v447_v52 = vpop.f32.mrf.mxu1 }
  0xdd   : > { %467 = vst.msk [vmem:[%s232_s30 + $0x28] sm:$0xff] %vm461_vm0, %v455_v50  ;;  %v448_v53 = vadd.f32 %v447_v52, %v419_v51 }
  0xdf   : > { %464 = vst.msk [vmem:[%s232_s30 + $0x10] sm:$0xff] %vm461_vm0, %v448_v53 }
  0xe1   : > { %v429_v54 = vpop.f32.mrf.mxu2 }
  0xe2   : > { %v457_v55 = vpop.f32.mrf.mxu3 }
  0xe3   : > { %v458_v56 = vadd.f32 %v457_v55, %v429_v54  ;;  %v421_v57 = vpop.f32.mrf.mxu0 }
  0xe4   : > { %v449_v58 = vpop.f32.mrf.mxu1 }
  0xe5   : > { %468 = vst.msk [vmem:[%s232_s30 + $0x30] sm:$0xff] %vm461_vm0, %v458_v56  ;;  %v450_v59 = vadd.f32 %v449_v58, %v421_v57 }
  0xe7   : > { %465 = vst.msk [vmem:[%s232_s30 + $0x18] sm:$0xff] %vm461_vm0, %v450_v59 }
  0xe9   : > { %v431_v60 = vpop.f32.mrf.mxu2 }
  0xea   : > { %v459_v61 = vpop.f32.mrf.mxu3 }
  0xeb PF: > { %s24_s21 = sadd.s32 1, %s870_s21   ;;  %s1029_s16 = smov %s854_s17 }
  0xec   : > { %p21_p1 = scmp.ge.s32.totalorder %s24_s21, 8   ;;  %s1030_s17 = smov %s858_s18 }
  0xed   : > { %s1031_s18 = smov %s943_s26  ;;  %s1032_s19 = smov %s866_s20 }
  0xee   : > { %s1033_s20 = smov %s1035_s22  ;;  %23 = sbr.rel (!%p21_p1) target bundleno = 10 (0xa), region = 71 }
  0xf3   :  { %496 = vsyncpa [#allocation5], 1 }
  0xf4   :  { %498 = vsyncpa [#allocation5 + $0x1], 1 }

</bundles_post_ra>
